<compile_context>
chip_gen: v6e
topology: v6e:2x2x1
jax: 0.10.0
libtpu: 0.0.40
codegen_flags: <defaults>
</compile_context>

<pallas_src>
import functools

import jax
import jax.numpy as jnp
from jax import lax
from jax.experimental import pallas as pl
from jax.experimental.pallas import tpu as pltpu


# ----------------------------------------------------------------------------
# layout / tiling helpers
# ----------------------------------------------------------------------------
def _pixel_split(H, W):
    """Factor the H*W pixel axis as (P, L) with L lane-dense (128) if possible.

    The reshape (..., H, W) <-> (..., P, L) is a free row-major regrouping.
    """
    HW = H * W
    if HW % 128 == 0:
        return HW // 128, 128
    return H, W


def _pick_tile(P, unit_bytes, target_bytes=4 * 1024 * 1024, mult=8):
    """Pixel-axis tile: a multiple of `mult` with tile*unit_bytes <= target.

    Prefers an exact divisor of P; otherwise returns a budget-capped tile and
    the caller uses a pl.cdiv grid (Pallas masks the ragged tail block).
    Never exceeds P, so blocks cannot blow past VMEM on odd resolutions.
    """
    if P <= mult:
        return P
    cap = (target_bytes // max(unit_bytes, 1)) // mult * mult
    cap = max(mult, min(P // mult * mult, cap))
    for cand in range(cap, mult - 1, -mult):
        if P % cand == 0:
            return cand
    return cap


# ----------------------------------------------------------------------------
# shared 5-tap (radius-2) pooling helpers built on pltpu.roll
# ----------------------------------------------------------------------------
def _pool5_taps(x, axis, neutral, op):
    """Edge-clamped radius-2 (5-tap) min/max pool along one of the last two dims.

    Implemented with XLU rolls on the live value (no padded VMEM scratch, no
    lane-unaligned ref slices).  Wrapped-around elements are detected with a
    rolled iota, so the boundary mask is independent of the roll direction
    convention.  Out-of-bounds neighbors contribute `neutral`.  Requires the
    pooled axis to have size >= 5.
    """
    ax = axis % x.ndim
    n = x.shape[ax]
    plane = x.shape[-2:]                 # the mask only depends on the 2D plane
    pax = ax - (x.ndim - 2)
    idx = lax.broadcasted_iota(jnp.int32, plane, pax)
    acc = x
    for s in (1, 2, n - 2, n - 1):       # neighbor taps at distances +-1, +-2
        src = pltpu.roll(idx, s, pax)    # index of the element landing here
        valid = jnp.abs(src - idx) <= 2  # wrapped positions have |diff| >= n-2
        acc = op(acc, jnp.where(valid, pltpu.roll(x, s, ax), neutral))
    return acc


def _pool5_major(x, neutral, op):
    """Edge-clamped radius-2 pool along the leading axis of a >=3-D value.

    Leading-axis slices of a value are plain vreg selections (no lane/sublane
    relayout), so concatenate + shifted slices is cheap and scratch-free.
    """
    n = x.shape[0]
    pad = jnp.full((2,) + x.shape[1:], neutral, x.dtype)
    xp = jnp.concatenate([pad, x, pad], axis=0)          # (n+4, ...)
    acc = x
    for s in (0, 1, 3, 4):
        acc = op(acc, xp[s:s + n])
    return acc


# ----------------------------------------------------------------------------
# Kernel 1: semantic softmax/argmax + depth clamp & depth-bin index (lane dense)
# ----------------------------------------------------------------------------
def _semantic_depth_kernel(bin_scale, depth_max_value,
                           logits_ref, depth_ref,
                           feat_ref, sem_ref, depthc_ref, dindex_ref):
    x = logits_ref[0]                                   # (C, tP, L) f32
    C = x.shape[0]

    # softmax over the class axis (math in f32, stored as bf16)
    mx = jnp.max(x, axis=0, keepdims=True)
    e = jnp.exp(x - mx)
    feat_ref[0] = (e / jnp.sum(e, axis=0, keepdims=True)).astype(jnp.bfloat16)

    # argmax over the class axis (first occurrence)
    cidx = lax.broadcasted_iota(jnp.int32, x.shape, 0)
    arg = jnp.min(jnp.where(x == mx, cidx, C), axis=0).astype(jnp.int32)
    sem_ref[0, 0] = arg

    # depth clamp + integer depth-bin index (truncation, matches .long())
    d = jnp.minimum(depth_ref[0, 0], depth_max_value)
    depthc_ref[0, 0] = d
    dindex_ref[0, 0] = (d * bin_scale).astype(jnp.int32)


def semantic_depth_pallas(logits, depth, depth_max_value):
    B, C, H, W = logits.shape
    P, L = _pixel_split(H, W)
    logits_r = logits.reshape(B, C, P, L)
    depth_r = depth.reshape(B, 1, P, L)
    unit = L * (C * 4 + C * 2 + 16)            # logits f32 + feats bf16 + small
    tP = _pick_tile(P, unit, target_bytes=4 * 1024 * 1024, mult=8)
    grid = (B, pl.cdiv(P, tP))

    kernel = functools.partial(_semantic_depth_kernel,
                               100.0 / depth_max_value, depth_max_value)
    out_shape = (
        jax.ShapeDtypeStruct((B, C, P, L), jnp.bfloat16),  # softmax features
        jax.ShapeDtypeStruct((B, 1, P, L), jnp.int32),     # argmax semantic
        jax.ShapeDtypeStruct((B, 1, P, L), jnp.float32),   # clamped depth
        jax.ShapeDtypeStruct((B, 1, P, L), jnp.int32),     # depth-bin index
    )
    spec_c = pl.BlockSpec((1, C, tP, L), lambda b, t: (b, 0, t, 0))
    spec_1 = pl.BlockSpec((1, 1, tP, L), lambda b, t: (b, 0, t, 0))
    feats, sem, dclamp, dindex = pl.pallas_call(
        kernel,
        grid=grid,
        in_specs=[spec_c, spec_1],
        out_specs=(spec_c, spec_1, spec_1, spec_1),
        out_shape=out_shape,
        compiler_params=pltpu.CompilerParams(
            dimension_semantics=("parallel", "parallel")),
    )(logits_r, depth_r)
    return feats, sem, dclamp, dindex, (P, L)


# ----------------------------------------------------------------------------
# Kernel 1b: 5x5 stuff erosion (== -max_pool2d(-mask,5,1,2)) via pltpu.roll,
#            fused with stuff_depth = clamped_depth * eroded_mask
# ----------------------------------------------------------------------------
def _stuff_erode_kernel(sem_ref, depthc_ref, stuff_ref, sdep_ref):
    m = (sem_ref[0] >= 10).astype(jnp.float32)          # (H, W) stuff mask
    # separable 5-tap min; out-of-bounds never shrinks the min -> neutral 1.0
    acc = _pool5_taps(m, axis=1, neutral=1.0, op=jnp.minimum)    # W / lanes
    out = _pool5_taps(acc, axis=0, neutral=1.0, op=jnp.minimum)  # H / sublanes
    stuff_ref[0] = out.astype(jnp.int32).astype(jnp.int8)
    sdep_ref[0] = out * depthc_ref[0]                   # stuff_depth


def stuff_erode_pallas(semantic, depth_clamped):
    B, H, W = semantic.shape
    spec = pl.BlockSpec((1, H, W), lambda b: (b, 0, 0))
    out_shape = (jax.ShapeDtypeStruct((B, H, W), jnp.int8),
                 jax.ShapeDtypeStruct((B, H, W), jnp.float32))
    # TODO(synk): for B == 1 on v7x (2 TensorCores) split H into row slabs with
    # a 2-row halo so both cores get work.
    return pl.pallas_call(
        _stuff_erode_kernel,
        grid=(B,),
        in_specs=[spec, spec],
        out_specs=(spec, spec),
        out_shape=out_shape,
        compiler_params=pltpu.CompilerParams(dimension_semantics=("parallel",)),
    )(semantic, depth_clamped)


# ----------------------------------------------------------------------------
# Kernel 2: fused per-depth-bin features + depth_weight + kept mask
#   features[b] channels: [softmax (C) | depth_weight | sign | abs]  (bf16)
#   grid = (B, pixel-tile, depth-tile)  -- depth innermost so the per-pixel
#   inputs (softmax, depth index, depth max) are fetched once per pixel tile.
# ----------------------------------------------------------------------------
def _lift_features_kernel(depth_max_value, num_classes, tile_bins,
                          feat2d_ref, occ_ref, dind_ref, dmax_ref,
                          features_ref, dw_ref, kept_ref):
    C = num_classes
    occ = occ_ref[0]                                    # (tD, tP, L) f32
    di = dind_ref[0]                                    # (1, tP, L) int32
    dm = dmax_ref[0]                                    # (1, tP, L) int32

    base = pl.program_id(2) * tile_bins
    bins = lax.broadcasted_iota(jnp.int32, occ.shape, 0) + base

    # depth_feat = (bin - depth_index) / 100 * depth_max  -> sign / abs channels
    diff = (bins - di).astype(jnp.float32) * (depth_max_value / 100.0)

    # depth_weight_kept = (bin > depth_index - 3) & (bin < depth_max + 5)
    keptb = jnp.logical_and(bins > di - 3, bins < dm + 5)
    keptf = keptb.astype(jnp.float32)

    # depth_weight = sigmoid(occupancy) * kept  (single exp + EUP reciprocal)
    dw = keptf * pl.reciprocal(1.0 + jnp.exp(-occ), approx=True)
    dw_bf = dw.astype(jnp.bfloat16)

    # repeated softmax channels written as one broadcast store (bf16 in, bf16 out)
    f2 = feat2d_ref[0]                                  # (C, tP, L) bf16
    features_ref[0, 0:C] = jnp.broadcast_to(f2[:, None], (C,) + occ.shape)
    features_ref[0, C] = dw_bf
    features_ref[0, C + 1] = jnp.sign(diff).astype(jnp.bfloat16)
    features_ref[0, C + 2] = jnp.abs(diff).astype(jnp.bfloat16)

    dw_ref[0] = dw_bf
    kept_ref[0] = keptb.astype(jnp.int32).astype(jnp.int8)


def lift_features_pallas(features2d, occ, depth_index, depth_max_bins,
                         depth_max_value, P, L):
    B, C = features2d.shape[:2]
    D = occ.shape[1]                                    # 100 depth bins

    # depth-bin tile (divisor of D, no ragged depth tail needed)
    tD = next(d for d in (25, 20, 10, 5, 4, 2, 1) if D % d == 0)
    # pixel tile: budget covers every block that scales with the tile size
    unit = L * (tD * ((C + 3) * 2 + 4 + 2 + 1) + C * 2 + 8)
    tP = _pick_tile(P, unit, target_bytes=6 * 1024 * 1024, mult=32)
    grid = (B, pl.cdiv(P, tP), D // tD)                 # depth-tile innermost

    kernel = functools.partial(_lift_features_kernel, depth_max_value, C, tD)
    out_shape = (
        jax.ShapeDtypeStruct((B, C + 3, D, P, L), jnp.bfloat16),  # features
        jax.ShapeDtypeStruct((B, D, P, L), jnp.bfloat16),         # depth_weight
        jax.ShapeDtypeStruct((B, D, P, L), jnp.int8),             # kept mask
    )
    feat2d_spec = pl.BlockSpec((1, C, tP, L), lambda b, t, d: (b, 0, t, 0))
    occ_spec = pl.BlockSpec((1, tD, tP, L), lambda b, t, d: (b, d, t, 0))
    pix_spec = pl.BlockSpec((1, 1, tP, L), lambda b, t, d: (b, 0, t, 0))
    featout_spec = pl.BlockSpec((1, C + 3, tD, tP, L),
                                lambda b, t, d: (b, 0, d, t, 0))
    bin_spec = pl.BlockSpec((1, tD, tP, L), lambda b, t, d: (b, d, t, 0))
    return pl.pallas_call(
        kernel,
        grid=grid,
        in_specs=[feat2d_spec, occ_spec, pix_spec, pix_spec],
        out_specs=(featout_spec, bin_spec, bin_spec),
        out_shape=out_shape,
        compiler_params=pltpu.CompilerParams(
            dimension_semantics=("parallel", "parallel", "parallel"),
            vmem_limit_bytes=32 * 1024 * 1024),
    )(features2d, occ, depth_index, depth_max_bins)


# ----------------------------------------------------------------------------
# Kernel 3: 5x5x5 max-pool (roll-based, scratch-free) fused with
#           padding_pre = pooled & kept & ~feat_kept    (int8 in / int8 out)
# ----------------------------------------------------------------------------
def _pool3d_mask_kernel(fk_ref, kept_ref, out_ref):
    fk = fk_ref[0].astype(jnp.float32)                  # (D1, D2, D3) 0/1
    acc = _pool5_taps(fk, axis=2, neutral=0.0, op=jnp.maximum)   # D3 / lanes
    acc = _pool5_taps(acc, axis=1, neutral=0.0, op=jnp.maximum)  # D2 / sublanes
    pooled = _pool5_major(acc, neutral=0.0, op=jnp.maximum)      # D1 / major

    # fused mask logic: padding_pre = pooled & kept & ~feat_kept
    keep = jnp.logical_and(pooled > 0.5, kept_ref[0] > 0)
    keep = jnp.logical_and(keep, fk < 0.5)
    out_ref[0] = keep.astype(jnp.int32).astype(jnp.int8)


def pool3d_padding_pallas(feat_kept_i8, kept_i8):
    B, D1, D2, D3 = feat_kept_i8.shape
    spec = pl.BlockSpec((1, D1, D2, D3), lambda b: (b, 0, 0, 0))
    # TODO(synk): for very large volumes (e.g. 128^3 on v7x's 64 MiB VMEM) tile
    # over D1 slabs with a 2-deep halo (also gives both TensorCores work at B=1).
    return pl.pallas_call(
        _pool3d_mask_kernel,
        grid=(B,),
        in_specs=[spec, spec],
        out_specs=spec,
        out_shape=jax.ShapeDtypeStruct((B, D1, D2, D3), jnp.int8),
        compiler_params=pltpu.CompilerParams(
            dimension_semantics=("parallel",),
            vmem_limit_bytes=48 * 1024 * 1024),
    )(feat_kept_i8, kept_i8)


# ----------------------------------------------------------------------------
# Plain-JAX glue: tiny sequential boundary fills (exact PyTorch semantics)
# ----------------------------------------------------------------------------
def stuff_padding_jax(padding, max_value):
    # replaces zeros in `padding` with the first nonzero of `max_value`
    nz = max_value != 0
    v = jnp.where(jnp.any(nz), max_value[jnp.argmax(nz)], max_value[-1])
    return jnp.where(padding == 0, v, padding)


def find_none_jax(a, min_value=0.0):
    n = a.shape[0]
    idx = jnp.arange(n)
    big = jnp.asarray(jnp.finfo(a.dtype).max, a.dtype)

    def body(i, a):
        left = (idx < i) & (a != 0)
        right = (idx > i) & (a != 0)
        l_min = jnp.where(jnp.any(left), jnp.min(jnp.where(left, a, big)), min_value)
        r_min = jnp.where(jnp.any(right), jnp.min(jnp.where(right, a, big)), min_value)
        new_val = jnp.maximum(l_min, r_min)
        return a.at[i].set(jnp.where(a[i] == 0, new_val, a[i]))

    return lax.fori_loop(0, n, body, a)


# ----------------------------------------------------------------------------
# Forward pass
# ----------------------------------------------------------------------------
def occupancy_aware_lifting(pred, kept, mapping, depth_max_value=6.0):
    semantic2d = pred['semantic2d'].astype(jnp.float32)
    depth = pred['depth'].astype(jnp.float32)
    occ = pred['occupancy2d'].astype(jnp.float32)
    B, C, H, W = semantic2d.shape
    D = occ.shape[1]                                    # 100 depth bins

    # --- kernel 1: softmax / argmax / depth clamp & bin index (lane dense) ---
    features2d, sem_r, dclamp_r, dindex_r, (P, L) = semantic_depth_pallas(
        semantic2d, depth, depth_max_value)
    semantic = sem_r.reshape(B, H, W)
    depth_c = dclamp_r.reshape(B, H, W)

    # --- kernel 1b: 5x5 stuff erosion fused with stuff_depth ---
    stuff_i8, stuff_depth = stuff_erode_pallas(semantic, depth_c)
    stuff = stuff_i8.astype(bool)

    # --- stuff depth boundary padding + hole filling (sequential, tiny) ---
    stuff_x_max = jnp.max(stuff_depth, axis=1)            # [B, W]
    stuff_y_max = jnp.max(stuff_depth, axis=2)            # [B, H]
    row0 = jax.vmap(stuff_padding_jax)(stuff_depth[:, 0], stuff_y_max)
    rowL = jax.vmap(stuff_padding_jax)(stuff_depth[:, -1], stuff_y_max[:, ::-1])
    col0 = jax.vmap(stuff_padding_jax)(stuff_depth[:, :, 0], stuff_x_max)
    colL = jax.vmap(stuff_padding_jax)(stuff_depth[:, :, -1], stuff_x_max[:, ::-1])
    sd = stuff_depth.at[:, 0, :].set(row0)
    sd = sd.at[:, -1, :].set(rowL)
    sd = sd.at[:, :, 0].set(col0)
    sd = sd.at[:, :, -1].set(colL)
    stuff_x = jax.vmap(find_none_jax)(jnp.max(sd, axis=1))   # [B, W]
    stuff_y = jax.vmap(find_none_jax)(jnp.max(sd, axis=2))   # [B, H]
    depth_max = jnp.minimum(stuff_x[:, None, :], stuff_y[:, :, None])   # [B,H,W]
    depth_max_bins = (depth_max * (100.0 / depth_max_value)).astype(jnp.int32)
    depth_max_bins = depth_max_bins.reshape(B, 1, P, L)

    # --- kernel 2: fused per-depth-bin features / depth_weight / kept mask ---
    occ_r = occ.reshape(B, D, P, L)
    features_r, dw_r, kept_i8 = lift_features_pallas(
        features2d, occ_r, dindex_r, depth_max_bins, depth_max_value, P, L)
    features = features_r.reshape(B, C + 3, D, H, W)            # bf16
    depth_weight = dw_r.reshape(B, D, H, W)                     # bf16
    depth_weight_kept_i8 = kept_i8.reshape(B, D, H, W)
    depth_weight_kept = depth_weight_kept_i8.astype(bool)

    # --- dense equivalent of: feat_kept[kept] = depth_weight_kept[gather] ---
    # TODO(synk): this XLA gather could move into a Pallas kernel with
    # scalar-prefetched indices / manual DMA to avoid one full-volume pass.
    m_b = mapping[..., 0].astype(jnp.int32)
    m_w = mapping[..., 1].astype(jnp.int32)
    m_h = mapping[..., 2].astype(jnp.int32)
    # hardcoded *100/6 follows the PyTorch source; clamp to the last bin so the
    # depth == depth_max boundary cannot index out of range.
    m_d = jnp.clip((mapping[..., 3] * (100.0 / 6.0)).astype(jnp.int32), 0, D - 1)
    gathered = depth_weight_kept_i8[m_b, m_d, m_h, m_w]      # [B,D1,D2,D3] int8
    feat_kept = jnp.logical_and(kept, gathered != 0)

    # --- kernel 3: fused 5x5x5 max-pool + (pooled & kept & ~feat_kept) ---
    padding_pre = pool3d_padding_pallas(feat_kept.astype(jnp.int8),
                                        kept.astype(jnp.int8))
    padding_kept = padding_pre.astype(bool)
    # batch_point == 0  <=>  feat_kept has no voxel in that batch
    has_points = jnp.any(feat_kept, axis=(1, 2, 3))
    D1, D2, D3 = kept.shape[1:]
    i1, i2, i3 = min(127, D1 - 1), min(127, D2 - 1), min(127, D3 - 1)
    padding_kept = padding_kept.at[:, i1, i2, i3].set(
        jnp.where(has_points, padding_kept[:, i1, i2, i3], True))

    # TODO(synk): MinkowskiEngine SparseTensor (RANDOM_SUBSAMPLE quantization),
    # mask_invalid_sparse_voxels, nonzero-based sparse coord/feature gathers,
    # the optional room_mask branch and the final frustum `mask` depend on
    # data-dependent shapes / Me and are not translated.

    return {
        'features': features,                    # [B, C+3, 100, H, W] bf16
        'depth_weight': depth_weight,            # [B, 100, H, W] bf16
        'depth_weight_kept': depth_weight_kept,  # [B, 100, H, W] bool
        'semantic': semantic,                    # [B, H, W] int32
        'stuff': stuff,                          # [B, H, W] bool
        'feat_kept': feat_kept,                  # [B, D1, D2, D3] bool
        'padding_kept': padding_kept,            # [B, D1, D2, D3] bool
    }


# ----------------------------------------------------------------------------
if __name__ == "__main__":
    key = jax.random.PRNGKey(0)
    B, C, H, W = 2, 16, 16, 128
    D1, D2, D3 = 16, 16, 128
    depth_max_value = 6.0

    k1, k2, k3, k4, k5, k6, k7 = jax.random.split(key, 7)
    semantic2d = jax.random.normal(k1, (B, C, H, W), jnp.float32)
    depth = jax.random.uniform(k2, (B, 1, H, W), jnp.float32, 0.5, 8.0)
    occupancy2d = jax.random.normal(k3, (B, 100, H, W), jnp.float32)
    kept = jax.random.bernoulli(k4, 0.3, (B, D1, D2, D3))

    bidx = jnp.broadcast_to(jnp.arange(B, dtype=jnp.float32)[:, None, None, None],
                            (B, D1, D2, D3))
    m_w = jax.random.randint(k5, (B, D1, D2, D3), 0, W).astype(jnp.float32)
    m_h = jax.random.randint(k6, (B, D1, D2, D3), 0, H).astype(jnp.float32)
    m_d = jax.random.uniform(k7, (B, D1, D2, D3), jnp.float32, 0.0,
                             depth_max_value - 1e-3)
    mapping = jnp.stack([bidx, m_w, m_h, m_d], axis=-1)

    pred = {'semantic2d': semantic2d, 'depth': depth, 'occupancy2d': occupancy2d}
    out = occupancy_aware_lifting(pred, kept, mapping, depth_max_value)
    jax.block_until_ready(out)
    print("KERNEL_OK")
</pallas_src>

<mosaic_0001>
module attributes {stable_mosaic.version = 11 : i64} {
  func.func @_semantic_depth_kernel(%arg0: i32, %arg1: i32, %arg2: memref<1x16x16x128xf32, #tpu.memory_space<vmem>>, %arg3: memref<1x1x16x128xf32, #tpu.memory_space<vmem>>, %arg4: memref<1x16x16x128xbf16, #tpu.memory_space<vmem>>, %arg5: memref<1x1x16x128xi32, #tpu.memory_space<vmem>>, %arg6: memref<1x1x16x128xf32, #tpu.memory_space<vmem>>, %arg7: memref<1x1x16x128xi32, #tpu.memory_space<vmem>>) attributes {dimension_semantics = [#tpu.dimension_semantics<parallel>, #tpu.dimension_semantics<parallel>], iteration_bounds = array<i64: 2, 1>, scalar_prefetch = 0 : i64, scratch_operands = 0 : i64, tpu.core_type = #tpu.core_type<tc>, window_params = [{transform_indices = @transform_0, window_bounds = array<i64: 1, 16, 16, 128>}, {transform_indices = @transform_1, window_bounds = array<i64: 1, 1, 16, 128>}, {transform_indices = @transform_2, window_bounds = array<i64: 1, 16, 16, 128>}, {transform_indices = @transform_3, window_bounds = array<i64: 1, 1, 16, 128>}, {transform_indices = @transform_4, window_bounds = array<i64: 1, 1, 16, 128>}, {transform_indices = @transform_5, window_bounds = array<i64: 1, 1, 16, 128>}]} {
    %c0 = arith.constant 0 : index
    %c0_0 = arith.constant 0 : index
    %c0_1 = arith.constant 0 : index
    %c0_2 = arith.constant 0 : index
    %0 = vector.load %arg2[%c0, %c0_0, %c0_1, %c0_2] : memref<1x16x16x128xf32, #tpu.memory_space<vmem>>, vector<1x16x16x128xf32>
    %1 = vector.shape_cast %0 : vector<1x16x16x128xf32> to vector<16x16x128xf32>
    %cst = arith.constant dense<0xFF800000> : vector<16x128xf32>
    %2 = vector.multi_reduction <maximumf>, %1, %cst [0] : vector<16x16x128xf32> to vector<16x128xf32>
    %3 = vector.shape_cast %2 : vector<16x128xf32> to vector<1x16x128xf32>
    %4 = vector.broadcast %3 : vector<1x16x128xf32> to vector<16x16x128xf32>
    %5 = arith.subf %1, %4 : vector<16x16x128xf32>
    %6 = math.exp %5 : vector<16x16x128xf32>
    %cst_3 = arith.constant dense<0.000000e+00> : vector<16x128xf32>
    %7 = vector.multi_reduction <add>, %6, %cst_3 [0] : vector<16x16x128xf32> to vector<16x128xf32>
    %8 = vector.shape_cast %7 : vector<16x128xf32> to vector<1x16x128xf32>
    %9 = vector.broadcast %8 : vector<1x16x128xf32> to vector<16x16x128xf32>
    %10 = arith.divf %6, %9 : vector<16x16x128xf32>
    %11 = arith.truncf %10 : vector<16x16x128xf32> to vector<16x16x128xbf16>
    %c0_4 = arith.constant 0 : index
    %c0_5 = arith.constant 0 : index
    %c0_6 = arith.constant 0 : index
    %c0_7 = arith.constant 0 : index
    %12 = vector.load %arg4[%c0_4, %c0_5, %c0_6, %c0_7] : memref<1x16x16x128xbf16, #tpu.memory_space<vmem>>, vector<1x16x16x128xbf16>
    %13 = vector.shape_cast %12 : vector<1x16x16x128xbf16> to vector<16x16x128xbf16>
    %14 = vector.shape_cast %11 : vector<16x16x128xbf16> to vector<1x16x16x128xbf16>
    tpu.vector_store %arg4[%c0_4, %c0_5, %c0_6, %c0_7], %14 {strides = array<i32>} : memref<1x16x16x128xbf16, #tpu.memory_space<vmem>>, vector<1x16x16x128xbf16>,
    %15 = tpu.iota {dimensions = array<i32: 0>} : vector<16x16x128xi32>
    %16 = vector.broadcast %3 : vector<1x16x128xf32> to vector<16x16x128xf32>
    %17 = arith.cmpf oeq, %1, %16 : vector<16x16x128xf32>
    %c16_i32 = arith.constant 16 : i32
    %18 = vector.broadcast %c16_i32 : i32 to vector<16x16x128xi32>
    %19 = arith.select %17, %15, %18 : vector<16x16x128xi1>, vector<16x16x128xi32>
    %cst_8 = arith.constant dense<2147483647> : vector<16x128xi32>
    %20 = vector.multi_reduction <minsi>, %19, %cst_8 [0] : vector<16x16x128xi32> to vector<16x128xi32>
    %c0_9 = arith.constant 0 : index
    %c0_10 = arith.constant 0 : index
    %c0_11 = arith.constant 0 : index
    %c0_12 = arith.constant 0 : index
    %21 = vector.load %arg5[%c0_9, %c0_10, %c0_11, %c0_12] : memref<1x1x16x128xi32, #tpu.memory_space<vmem>>, vector<1x1x16x128xi32>
    %22 = vector.shape_cast %21 : vector<1x1x16x128xi32> to vector<16x128xi32>
    %23 = vector.shape_cast %20 : vector<16x128xi32> to vector<1x1x16x128xi32>
    tpu.vector_store %arg5[%c0_9, %c0_10, %c0_11, %c0_12], %23 {strides = array<i32>} : memref<1x1x16x128xi32, #tpu.memory_space<vmem>>, vector<1x1x16x128xi32>,
    %c0_13 = arith.constant 0 : index
    %c0_14 = arith.constant 0 : index
    %c0_15 = arith.constant 0 : index
    %c0_16 = arith.constant 0 : index
    %24 = vector.load %arg3[%c0_13, %c0_14, %c0_15, %c0_16] : memref<1x1x16x128xf32, #tpu.memory_space<vmem>>, vector<1x1x16x128xf32>
    %25 = vector.shape_cast %24 : vector<1x1x16x128xf32> to vector<16x128xf32>
    %cst_17 = arith.constant 6.000000e+00 : f32
    %26 = vector.broadcast %cst_17 : f32 to vector<16x128xf32>
    %27 = arith.minimumf %25, %26 : vector<16x128xf32>
    %c0_18 = arith.constant 0 : index
    %c0_19 = arith.constant 0 : index
    %c0_20 = arith.constant 0 : index
    %c0_21 = arith.constant 0 : index
    %28 = vector.load %arg6[%c0_18, %c0_19, %c0_20, %c0_21] : memref<1x1x16x128xf32, #tpu.memory_space<vmem>>, vector<1x1x16x128xf32>
    %29 = vector.shape_cast %28 : vector<1x1x16x128xf32> to vector<16x128xf32>
    %30 = vector.shape_cast %27 : vector<16x128xf32> to vector<1x1x16x128xf32>
    tpu.vector_store %arg6[%c0_18, %c0_19, %c0_20, %c0_21], %30 {strides = array<i32>} : memref<1x1x16x128xf32, #tpu.memory_space<vmem>>, vector<1x1x16x128xf32>,
    %cst_22 = arith.constant 16.666666 : f32
    %31 = vector.broadcast %cst_22 : f32 to vector<16x128xf32>
    %32 = arith.mulf %27, %31 : vector<16x128xf32>
    %33 = arith.fptosi %32 : vector<16x128xf32> to vector<16x128xi32>
    %c0_23 = arith.constant 0 : index
    %c0_24 = arith.constant 0 : index
    %c0_25 = arith.constant 0 : index
    %c0_26 = arith.constant 0 : index
    %34 = vector.load %arg7[%c0_23, %c0_24, %c0_25, %c0_26] : memref<1x1x16x128xi32, #tpu.memory_space<vmem>>, vector<1x1x16x128xi32>
    %35 = vector.shape_cast %34 : vector<1x1x16x128xi32> to vector<16x128xi32>
    %36 = vector.shape_cast %33 : vector<16x128xi32> to vector<1x1x16x128xi32>
    tpu.vector_store %arg7[%c0_23, %c0_24, %c0_25, %c0_26], %36 {strides = array<i32>} : memref<1x1x16x128xi32, #tpu.memory_space<vmem>>, vector<1x1x16x128xi32>,
    return
  }
  func.func @transform_0(%arg0: i32, %arg1: i32) -> (i32, i32, i32, i32) {
    %c0_i32 = arith.constant 0 : i32
    %c0_i32_0 = arith.constant 0 : i32
    %c0_i32_1 = arith.constant 0 : i32
    return %arg0, %c0_i32, %arg1, %c0_i32_0 : i32, i32, i32, i32
  }
  func.func @transform_1(%arg0: i32, %arg1: i32) -> (i32, i32, i32, i32) {
    %c0_i32 = arith.constant 0 : i32
    %c0_i32_0 = arith.constant 0 : i32
    %c0_i32_1 = arith.constant 0 : i32
    return %arg0, %c0_i32, %arg1, %c0_i32_0 : i32, i32, i32, i32
  }
  func.func @transform_2(%arg0: i32, %arg1: i32) -> (i32, i32, i32, i32) {
    %c0_i32 = arith.constant 0 : i32
    %c0_i32_0 = arith.constant 0 : i32
    %c0_i32_1 = arith.constant 0 : i32
    return %arg0, %c0_i32, %arg1, %c0_i32_0 : i32, i32, i32, i32
  }
  func.func @transform_3(%arg0: i32, %arg1: i32) -> (i32, i32, i32, i32) {
    %c0_i32 = arith.constant 0 : i32
    %c0_i32_0 = arith.constant 0 : i32
    %c0_i32_1 = arith.constant 0 : i32
    return %arg0, %c0_i32, %arg1, %c0_i32_0 : i32, i32, i32, i32
  }
  func.func @transform_4(%arg0: i32, %arg1: i32) -> (i32, i32, i32, i32) {
    %c0_i32 = arith.constant 0 : i32
    %c0_i32_0 = arith.constant 0 : i32
    %c0_i32_1 = arith.constant 0 : i32
    return %arg0, %c0_i32, %arg1, %c0_i32_0 : i32, i32, i32, i32
  }
  func.func @transform_5(%arg0: i32, %arg1: i32) -> (i32, i32, i32, i32) {
    %c0_i32 = arith.constant 0 : i32
    %c0_i32_0 = arith.constant 0 : i32
    %c0_i32_1 = arith.constant 0 : i32
    return %arg0, %c0_i32, %arg1, %c0_i32_0 : i32, i32, i32, i32
  }
}

</mosaic_0001>

<bundles_post_ra>
// kernel: tpu_custom_call.1
= control target key start
LH: loop header
LB: loop body
LE: loop exit
PB: predicated region body
PF: predicated region fallthrough
CT: control target
= control target key end

     0   :  { %s2609_s0 = inlined_call_operand.hbm [shape: f32[2,16,16,128], index: 0, kind: input, shape index: {}]   ;;  %s2610_s1 = inlined_call_operand.hbm [shape: f32[2,1,16,128], index: 1, kind: input, shape index: {}]   ;;  %s2611_s2 = inlined_call_operand.hbm [shape: bf16[2,16,16,128], index: 2, kind: output, shape index: {0}]   ;;  %s2612_s3 = inlined_call_operand.hbm [shape: s32[2,1,16,128], index: 3, kind: output, shape index: {1}]   ;;  %s2613_s4 = inlined_call_operand.hbm [shape: f32[2,1,16,128], index: 4, kind: output, shape index: {2}]   ;;  %s2614_s5 = inlined_call_operand.hbm [shape: s32[2,1,16,128], index: 5, kind: output, shape index: {3}]  }
   0x1   :  { %2618 = sst [smem:[#allocation21_spill]] %s2609_s0 }
   0x2   :  { %11 = vsyncpa [#allocation3], 0 }
   0x3   :  { %13 = vsyncpa [#allocation3 + $0x1], 0 }
   0x4   :  { %14 = vsyncpa [#allocation6], 0 }
   0x5   :  { %16 = vsyncpa [#allocation6 + $0x1], 0 }
   0x6   :  { %17 = vsyncpa [#allocation4], 0 }
   0x7   :  { %19 = vsyncpa [#allocation4 + $0x1], 0 }
   0x8   :  { %20 = vsyncpa [#allocation9], 0 }
   0x9   :  { %22 = vsyncpa [#allocation9 + $0x1], 0 }
   0xa   :  { %23 = vsyncpa [#allocation12], 0 }
   0xb   :  { %25 = vsyncpa [#allocation12 + $0x1], 0  ;;  %s1793_s18 = smov 0   ;;  %s1795_s19 = smov 0  }
   0xc   :  { %s1797_s20 = smov 0   ;;  %s1799_s21 = smov 0  }
   0xd   :  { %s1801_s22 = smov 0   ;;  %s1803_s23 = smov 0  }
   0xe LB: > { %2619 = sst [smem:[#allocation18_spill]] %s1736_s20  ;;  %s1824_s24 = sadd.s32 4294967295, %s1748_s23   ;;  %s1748_s23 = sphi %s1803_s23, %s31_s23   ;;  %s1744_s22 = sphi %s1801_s22, %s2636_s22   ;;  %s1740_s21 = sphi %s1799_s21, %s2635_s21   ;;  %s1736_s20 = sphi %s1797_s20, %s2631_s20   ;;  %s1732_s19 = sphi %s1795_s19, %s2634_s19   ;;  %s1728_s18 = sphi %s1793_s18, %s2633_s18  }
   0xf   : > { %s2615_s25 = sadd.s32 4294967294, %s1748_s23   ;;  %s43_s26 = sadd.s32 1, %s1744_s22 }
  0x10   : > { %s52_s27 = sadd.s32 1, %s1736_s20  ;;  %p45_p0 = scmp.ge.s32.totalorder %s43_s26, 2 }
  0x11   : > { %p59_p1 = scmp.ne.s32.totalorder %s1736_s20, %s1732_s19  ;;  %p60_p2 = scmp.eq.s32.totalorder %s1748_s23, 0 }
  0x12   : > { %p65_p3 = scmp.ne.s32.totalorder %s1732_s19, %s1728_s18  ;;  %s2638_s26 = smov (%p45_p0, %s43_s26), 0 }
  0x13   : > { %2620 = sst [smem:[#allocation19_spill]] %s2638_s26  ;;  %p1836_p4 = por %p60_p2, %p59_p1 }
  0x14   : > { %p66_p5 = scmp.eq.s32.totalorder %s1824_s24, 0  ;;  %s47_s29 = ssub.s32 %s1744_s22, %s2638_s26 }
  0x15   : > { %p119_p6 = scmp.eq.s32.totalorder %s1824_s24, 1  ;;  %p50_p7 = scmp.eq.s32.totalorder %s47_s29, 0 }
  0x16   : > { %p1844_p8 = por %p66_p5, %p65_p3  ;;  %p125_p10 = scmp.eq.s32.totalorder %s2615_s25, 1 }
  0x17   : > { %p1848_p9 = por %p119_p6, %p59_p1  ;;  %p1168_p12 = scmp.ge.s32.totalorder %s1748_s23, 2 }
  0x18   : > { %s1855_s7 = scalar_select %p50_p7, %s1736_s20, %s52_s27  }
  0x19   : > { %p1857_p11 = por %p125_p10, %p65_p3  ;;  %p1397_p13 = scmp.lt.s32.totalorder %s1748_s23, 2 }
  0x1a   : > { %2624 = sst [smem:[#allocation20_spill]] %s1855_s7  ;;  %s1864_s9 = sand.u32 1, %s1736_s20  }
  0x1b   : > { %s1169_s10 = sshll.u32 %s1864_s9, 8  ;;  %s1228_s11 = sshll.u32 %s1744_s22, 12 }
  0x1c   : > { %s2626_s0 = sld [smem:[#allocation21_spill]]  ;;  %s233_s15 = scalar_lea.vmem [#allocation2], %s1169_s10 }
  0x1d   : > { %s242_s16 = sshll.u32 %s233_s15, 4  ;;  %p1873_p0 = pnand %p1397_p13, %p1836_p4  ;;  %s243_s16 = int_to_ptr.vmem [resolvable:$true] %s242_s16 }
  0x1e   : > { %p1175_p1 = scmp.ge.s32.totalorder %s1748_s23, 1  ;;  %s230_s27 = scalar_lea.sflag [#allocation3], %s1864_s9 }
  0x1f   : > { %p1524_p2 = pneg %p1873_p0  ;;  %s1535_s29 = scalar_lea.vmem %s243_s16, 4096 }
  0x20   : > { %p1536_p3 = scmp.ne.s32.totalorder %s243_s16, %s1535_s29  ;;  %s1750_s10 = smov [#allocation2]  }
  0x22   : > { %s241_s14 = scalar_lea.hbm %s2626_s0, %s1228_s11  ;;  %p1538_p5 = pnand %p1536_p3, %p1524_p2 }
  0x23   : > { %s1540_s11 = sshll.u32 %s1750_s10, 4  ;;  %s1541_s11 = int_to_ptr.vmem [resolvable:$false] %s1540_s11 }
  0x24   : > { %p1539_p6 = pneg %p1538_p5  ;;  %s1542_s28 = scalar_lea.vmem %s1541_s11, 8192 }
  0x25   : > { %p1543_p4 = scmp.lt.s32.totalorder %s243_s16, %s1541_s11  ;;  %p1544_p7 = scmp.lt.s32.totalorder %s1542_s28, %s1535_s29 }
  0x27   : > { %p1545_p10 = por %p1544_p7, %p1543_p4 }
  0x29   : > { %p1546_p13 = pnand %p1545_p10, %p1539_p6 }
  0x2b   : > { %1549 = shalt.err (!%p1546_p13)
}
  0x2c   : > { %s1751_s12 = smov 128   ;;  %s1752_s13 = smov 8  }
  0x2d   : > { %1380 = dma.hbm_to_vmem [thread:$0]  (!%p1873_p0), %s241_s14, 4096, %s243_s16, %s230_s27, %s1751_s12, %s1751_s12, %s1752_s13  }
  0x2e   : > { %p273_p3 = scmp.lt.s32.totalorder %s1748_s23, 3  ;;  %s1172_s15 = sshll.u32 %s1864_s9, 4 }
  0x2f   : > { %s1229_s10 = sshll.u32 %s1744_s22, 8  ;;  %s256_s0 = scalar_lea.vmem [#allocation5], %s1172_s15 }
  0x30   : > { %p1891_p5 = pnand %p1175_p1, %p273_p3  ;;  %s264_s25 = scalar_lea.hbm %s2610_s1, %s1229_s10 }
  0x31   : > { %s265_s26 = sshll.u32 %s256_s0, 4  ;;  %s253_s7 = scalar_lea.sflag [#allocation6], %s1864_s9  ;;  %s266_s26 = int_to_ptr.vmem [resolvable:$true] %s265_s26 }
  0x32   : > { %s1563_s20 = scalar_lea.vmem %s266_s26, 256  ;;  %s1753_s14 = smov [#allocation5]  }
  0x33   : > { %p1564_p6 = scmp.ne.s32.totalorder %s266_s26, %s1563_s20  ;;  %s1568_s16 = sshll.u32 %s1753_s14, 4  ;;  %s1569_s16 = int_to_ptr.vmem [resolvable:$false] %s1568_s16 }
  0x34   : > { %s1570_s27 = scalar_lea.vmem %s1569_s16, 512  ;;  %p1571_p1 = scmp.lt.s32.totalorder %s266_s26, %s1569_s16 }
  0x35   : > { %p1566_p4 = pnand %p1564_p6, %p1524_p2  ;;  %p1572_p10 = scmp.lt.s32.totalorder %s1570_s27, %s1563_s20 }
  0x37   : > { %p1567_p7 = pneg %p1566_p4  ;;  %p1573_p13 = por %p1572_p10, %p1571_p1 }
  0x39   : > { %p1574_p3 = pnand %p1573_p13, %p1567_p7 }
  0x3b   : > { %1577 = shalt.err (!%p1574_p3)
}
  0x3c   : > { %1383 = dma.hbm_to_vmem [thread:$0]  (!%p1873_p0), %s264_s25, 256, %s266_s26, %s253_s7, %s1751_s12, %s1751_s12, %s1752_s13  }
  0x3d   : > { %277 = sbr.rel (%p1891_p5) target bundleno = 253 (0xfd), region = 28  ;;  %s1907_s0 = sand.u32 (!%p1891_p5), 1, %s1732_s19  }
  0x3e   : > { %s1176_s9 = sshll.u32 (!%p1891_p5), %s1907_s0, 8  ;;  %s280_s15 = scalar_lea.sflag (!%p1891_p5), [#allocation3], %s1907_s0 }
  0x3f   : > { %s1911_s10 = scalar_lea.vmem (!%p1891_p5), [#allocation2], %s1176_s9 }
  0x42   : > { %1707 = dma.done.wait (%p1844_p8), %s280_s15, 4096  }
  0x43   : > { %1709 = vsyncadd (%p1844_p8), %s280_s15, 4294963200  ;;  %s1918_s20 = sshll.u32 %s1907_s0, 4  ;;  %s289_s25 = scalar_lea.sflag [#allocation6], %s1907_s0 }
  0x44   : > { %s292_s26 = scalar_lea.vmem [#allocation5], %s1918_s20 }
  0x45   : > { %1711 = dma.done.wait (%p1844_p8), %s289_s25, 256  }
  0x46   : > { %1713 = vsyncadd (%p1844_p8), %s289_s25, 4294967040  ;;  %v1927_v0 = vld [vmem:[%s1911_s10] sm:$0xff]  ;;  %v1930_v1 = vld [vmem:[%s1911_s10 + $0x10] sm:$0xff]  ;;  %s1981_s30 = scalar_lea.vmem [#allocation10], %s1918_s20  ;;  %s2016_s7 = scalar_lea.vmem [#allocation11], %s1918_s20 }
  0x47   : > { %v1933_v2 = vld [vmem:[%s1911_s10 + $0x20] sm:$0xff]  ;;  %v1936_v3 = vld [vmem:[%s1911_s10 + $0x30] sm:$0xff]  ;;  %v1965_v16 = vld [vmem:[%s1911_s10 + $0x8] sm:$0xff]  ;;  %s950_s17 = sshll.u32 %s2016_s7, 4  ;;  %s2097_s12 = sshll.u32 %s1740_s21, 8  ;;  %s2103_s17 = int_to_ptr.vmem [resolvable:$true] %s950_s17 }
  0x48   : > { %v377_v4 = vmax.f32 %v1927_v0, %v1933_v2  ;;  %v1941_v5 = vld [vmem:[%s1911_s10 + $0x40] sm:$0xff]  ;;  %v1944_v6 = vld [vmem:[%s1911_s10 + $0x50] sm:$0xff]  ;;  %v378_v7 = vmax.f32 %v1930_v1, %v1936_v3  ;;  %v1968_v17 = vld [vmem:[%s1911_s10 + $0x28] sm:$0xff]  ;;  %s2113_s11 = scalar_lea.hbm %s2614_s5, %s2097_s12  ;;  %s881_s28 = scalar_lea.sflag [#allocation12], %s1907_s0 }
  0x49   : > { %v1951_v10 = vld [vmem:[%s1911_s10 + $0x60] sm:$0xff]  ;;  %v1954_v11 = vld [vmem:[%s1911_s10 + $0x70] sm:$0xff]  ;;  %v1971_v19 = vld [vmem:[%s1911_s10 + $0x18] sm:$0xff]  ;;  %v392_v26 = vmax.f32 %v1965_v16, %v1968_v17  ;;  %s1578_s14 = scalar_lea.vmem %s2103_s17, 256  ;;  %s1755_s16 = smov [#allocation11]  }
  0x4a   : > { %v379_v8 = vmax.f32 %v377_v4, %v1941_v5  ;;  %v380_v9 = vmax.f32 %v378_v7, %v1944_v6  ;;  %v1957_v12 = vld [vmem:[%s1911_s10 + $0x80] sm:$0xff]  ;;  %v1960_v13 = vld [vmem:[%s1911_s10 + $0x90] sm:$0xff]  ;;  %v1974_v20 = vld [vmem:[%s1911_s10 + $0x38] sm:$0xff]  ;;  %v1754_v7 = vmov 16   ;;  %p1579_p8 = scmp.ne.s32.totalorder %s2103_s17, %s1578_s14  ;;  %s1582_s27 = sshll.u32 %s1755_s16, 4  ;;  %s1583_s27 = int_to_ptr.vmem [resolvable:$false] %s1582_s27 }
  0x4b   : > { %v853_v18 = vld [vmem:[%s292_s26] sm:$0xff]  ;;  %v854_v22 = vld [vmem:[%s292_s26 + $0x8] sm:$0xff]  ;;  %v393_v31 = vmax.f32 %v1971_v19, %v1974_v20  ;;  %s1584_s9 = scalar_lea.vmem %s1583_s27, 512  ;;  %p1585_p5 = scmp.lt.s32.totalorder %s2103_s17, %s1583_s27 }
  0x4c   : > { %v381_v14 = vmax.f32 %v379_v8, %v1951_v10  ;;  %v382_v15 = vmax.f32 %v380_v9, %v1954_v11  ;;  %v855_v21 = vmin.f32 %v853_v18, 6.0  ;;  %v856_v23 = vmin.f32 %v854_v22, 6.0  ;;  %v1985_v28 = vld [vmem:[%s1911_s10 + $0xa0] sm:$0xff]  ;;  %v1988_v29 = vld [vmem:[%s1911_s10 + $0xb0] sm:$0xff]  ;;  %v1991_v30 = vld [vmem:[%s1911_s10 + $0x48] sm:$0xff]  ;;  %p1580_p0 = pnand %p1579_p8, %p1848_p9  ;;  %p1586_p6 = scmp.lt.s32.totalorder %s1584_s9, %s1578_s14 }
  0x4d   : > { %v1997_v32 = vld [vmem:[%s1911_s10 + $0x58] sm:$0xff]  ;;  %v394_v36 = vmax.f32 %v392_v26, %v1991_v30  ;;  %v2003_v38 = vld [vmem:[%s1911_s10 + $0xc0] sm:$0xff]  ;;  %v2006_v39 = vld [vmem:[%s1911_s10 + $0xd0] sm:$0xff] }
  0x4e   : > { %v383_v24 = vmax.f32 %v381_v14, %v1957_v12  ;;  %v384_v25 = vmax.f32 %v382_v15, %v1960_v13  ;;  %857 = vst [vmem:[%s1981_s30] sm:$0xff] %v855_v21  ;;  %v859_v27 = vmul.f32 16.666666, %v855_v21  ;;  %858 = vst [vmem:[%s1981_s30 + $0x8] sm:$0xff] %v856_v23  ;;  %v2009_v40 = vld [vmem:[%s1911_s10 + $0x68] sm:$0xff]  ;;  %v395_v41 = vmax.f32 %v393_v31, %v1997_v32  ;;  %v2013_v42 = vld [vmem:[%s1911_s10 + $0x78] sm:$0xff]  ;;  %p1581_p2 = pneg %p1580_p0  ;;  %p1587_p4 = por %p1586_p6, %p1585_p5 }
  0x4f   : > { %v396_v45 = vmax.f32 %v394_v36, %v2009_v40  ;;  %v2023_v46 = vld [vmem:[%s1911_s10 + $0xe0] sm:$0xff]  ;;  %v2026_v47 = vld [vmem:[%s1911_s10 + $0xf0] sm:$0xff]  ;;  %v2029_v48 = vld [vmem:[%s1911_s10 + $0x88] sm:$0xff]  ;;  %v860_v59 = vmul.f32 16.666666, %v856_v23 }
  0x50   : > { %v1361_v33 = vtrunc.f32 %v859_v27  ;;  %v385_v34 = vmax.f32 %v383_v24, %v1985_v28  ;;  %v386_v35 = vmax.f32 %v384_v25, %v1988_v29  ;;  %v397_v49 = vmax.f32 %v395_v41, %v2013_v42  ;;  %v2033_v50 = vld [vmem:[%s1911_s10 + $0x98] sm:$0xff]  ;;  %v2039_v54 = vld [vmem:[%s1911_s10 + $0xa8] sm:$0xff]  ;;  %p1588_p7 = pnand %p1587_p4, %p1581_p2 }
  0x51   : > { %v398_v53 = vmax.f32 %v396_v45, %v2029_v48  ;;  %v2043_v56 = vld [vmem:[%s1911_s10 + $0xb8] sm:$0xff]  ;;  %v2049_v60 = vld [vmem:[%s1911_s10 + $0xc8] sm:$0xff]  ;;  %v1363_v4 = vtrunc.f32 %v860_v59 }
  0x52   : > { %v1362_v37 = vcvt.f32.s32 %v1361_v33  ;;  %v387_v43 = vmax.f32 %v385_v34, %v2003_v38  ;;  %v388_v44 = vmax.f32 %v386_v35, %v2006_v39  ;;  %v399_v55 = vmax.f32 %v397_v49, %v2033_v50  ;;  %v2061_v62 = vld [vmem:[%s1911_s10 + $0xd8] sm:$0xff]  ;;  %v2125_v41 = vld [vmem:[%s1911_s10 + $0xe8] sm:$0xff] }
  0x53   : > { %v400_v58 = vmax.f32 %v398_v53, %v2039_v54  ;;  %v1364_v33 = vcvt.f32.s32 %v1363_v4 }
  0x54   : > { %863 = vst [vmem:[%s2016_s7] sm:$0xff] %v1362_v37  ;;  %v389_v51 = vmax.f32 %v387_v43, %v2023_v46  ;;  %v390_v52 = vmax.f32 %v388_v44, %v2026_v47  ;;  %v401_v61 = vmax.f32 %v399_v55, %v2043_v56  ;;  %v2128_v43 = vld [vmem:[%s1911_s10 + $0xf8] sm:$0xff] }
  0x55   : > { %v2068_v63 = vmax.f32 %v400_v58, %v2049_v60  ;;  %864 = vst [vmem:[%s2016_s7 + $0x8] sm:$0xff] %v1364_v33 }
  0x56   : > { %v2045_v57 = vmax.f32 %v389_v51, %v390_v52  ;;  %v2082_v21 = vmax.f32 %v401_v61, %v2061_v62 }
  0x58   : > { %vm727_vm0 = vcmp.eq.f32.partialorder %v1927_v0, %v2045_v57  ;;  %vm729_vm1 = vcmp.eq.f32.partialorder %v1930_v1, %v2045_v57  ;;  %vm731_vm2 = vcmp.eq.f32.partialorder %v1933_v2, %v2045_v57  ;;  %vm733_vm3 = vcmp.eq.f32.partialorder %v1936_v3, %v2045_v57 }
  0x59   : > { %vm735_vm4 = vcmp.eq.f32.partialorder %v1941_v5, %v2045_v57  ;;  %vm737_vm5 = vcmp.eq.f32.partialorder %v1944_v6, %v2045_v57  ;;  %v759_v8 = vsel %vm727_vm0, 0, %v1754_v7  ;;  %v761_v9 = vsel %vm729_vm1, 1, %v1754_v7 }
  0x5a   : > { %v763_v14 = vsel %vm731_vm2, 2, %v1754_v7  ;;  %v765_v15 = vsel %vm733_vm3, 3, %v1754_v7  ;;  %v409_v18 = vsub.f32 %v1930_v1, %v2045_v57  ;;  %vm739_vm6 = vcmp.eq.f32.partialorder %v1951_v10, %v2045_v57 }
  0x5b   : > { %vm741_vm7 = vcmp.eq.f32.partialorder %v1954_v11, %v2045_v57  ;;  %v411_v22 = vsub.f32 %v1933_v2, %v2045_v57  ;;  %vm743_vm8 = vcmp.eq.f32.partialorder %v1957_v12, %v2045_v57  ;;  %v767_v23 = vsel %vm735_vm4, 4, %v1754_v7 }
  0x5c   : > { %v769_v24 = vsel %vm737_vm5, 5, %v1754_v7  ;;  %vm745_vm9 = vcmp.eq.f32.partialorder %v1960_v13, %v2045_v57  ;;  %vm747_vm10 = vcmp.eq.f32.partialorder %v1985_v28, %v2045_v57  ;;  %vm791_vm11 = vcmp.lt.s32.totalorder %v759_v8, %v763_v14 }
  0x5d   : > { %vm793_vm12 = vcmp.lt.s32.totalorder %v761_v9, %v765_v15  ;;  %v771_v25 = vsel %vm739_vm6, 6, %v1754_v7  ;;  %v773_v26 = vsel %vm741_vm7, 7, %v1754_v7  ;;  %v792_v27 = vsel %vm791_vm11, %v759_v8, %v763_v14 }
  0x5e   : > { %v794_v31 = vsel %vm793_vm12, %v761_v9, %v765_v15  ;;  %vm749_vm13 = vcmp.eq.f32.partialorder %v1988_v29, %v2045_v57  ;;  %vm795_vm14 = vcmp.lt.s32.totalorder %v792_v27, %v767_v23  ;;  %v775_v34 = vsel %vm743_vm8, 8, %v1754_v7 }
  0x5f   : > { %vm797_vm15 = vcmp.lt.s32.totalorder %v794_v31, %v769_v24  ;;  %v777_v35 = vsel %vm745_vm9, 9, %v1754_v7  ;;  %v796_v36 = vsel %vm795_vm14, %v792_v27, %v767_v23  ;;  %vm751_vm0 = vcmp.eq.f32.partialorder %v2003_v38, %v2045_v57 }
  0x60   : > { %v798_v37 = vsel %vm797_vm15, %v794_v31, %v769_v24  ;;  %vm753_vm1 = vcmp.eq.f32.partialorder %v2006_v39, %v2045_v57  ;;  %vm799_vm2 = vcmp.lt.s32.totalorder %v796_v36, %v771_v25  ;;  %v779_v44 = vsel %vm747_vm10, 10, %v1754_v7 }
  0x61   : > { %vm801_vm3 = vcmp.lt.s32.totalorder %v798_v37, %v773_v26  ;;  %v781_v45 = vsel %vm749_vm13, 11, %v1754_v7  ;;  %v800_v49 = vsel %vm799_vm2, %v796_v36, %v771_v25 }
  0x62   : > { %v802_v51 = vsel %vm801_vm3, %v798_v37, %v773_v26 }
  0x63   : > { %1591 = shalt.err (!%p1588_p7)
}
  0x64   : > { %s1592_s15 = scalar_lea.hbm %s2113_s11, 256  ;;  %s1596_s26 = scalar_lea.hbm %s2614_s5, 512 }
  0x65   : > { %p1593_p1 = scmp.ne.s32.totalorder %s2113_s11, %s1592_s15  ;;  %p1597_p3 = scmp.lt.s32.totalorder %s2113_s11, %s2614_s5 }
  0x66   : > { %p1598_p8 = scmp.lt.s32.totalorder %s1596_s26, %s1592_s15 }
  0x67   : > { %p1594_p10 = pnand %p1593_p1, %p1848_p9 }
  0x68   : > { %p1599_p0 = por %p1598_p8, %p1597_p3 }
  0x69   : > { %p1595_p13 = pneg %p1594_p10 }
  0x6b   : > { %p1600_p2 = pnand %p1599_p0, %p1595_p13 }
  0x6d   : > { %1603 = shalt.err (!%p1600_p2)
}
  0x6e   : > { %s1756_s29 = smov 128   ;;  %s1757_s14 = smov 8   ;;  %vm755_vm4 = vcmp.eq.f32.partialorder %v2023_v46, %v2045_v57  ;;  %vm757_vm5 = vcmp.eq.f32.partialorder %v2026_v47, %v2045_v57  ;;  %vm803_vm6 = vcmp.lt.s32.totalorder %v800_v49, %v775_v34  ;;  %vm805_vm7 = vcmp.lt.s32.totalorder %v802_v51, %v777_v35 }
  0x6f   : > { %1372 = dma.vmem_to_hbm [thread:$0]  (%p1848_p9), %s2103_s17, 256, %s2113_s11, %s881_s28, %s1756_s29, %s1756_s29, %s1757_s14   ;;  %v783_v52 = vsel %vm751_vm0, 12, %v1754_v7  ;;  %v785_v53 = vsel %vm753_vm1, 13, %v1754_v7  ;;  %v804_v55 = vsel %vm803_vm6, %v800_v49, %v775_v34  ;;  %v806_v58 = vsel %vm805_vm7, %v802_v51, %v777_v35 }
  0x70   : > { %vm807_vm8 = vcmp.lt.s32.totalorder %v804_v55, %v779_v44  ;;  %vm809_vm9 = vcmp.lt.s32.totalorder %v806_v58, %v781_v45  ;;  %v404_v59 = vmax.f32 %v2068_v63, %v2125_v41  ;;  %v405_v61 = vmax.f32 %v2082_v21, %v2128_v43  ;;  %s2208_s17 = scalar_lea.vmem [#allocation8], %s1918_s20  ;;  %s870_s11 = sand.u32 1, %s1824_s24  }
  0x71   : > { %v787_v4 = vsel %vm755_vm4, 14, %v1754_v7  ;;  %v789_v8 = vsel %vm757_vm5, 15, %v1754_v7  ;;  %v808_v9 = vsel %vm807_vm8, %v804_v55, %v779_v44  ;;  %v810_v14 = vsel %vm809_vm9, %v806_v58, %v781_v45  ;;  %s914_s20 = sshll.u32 %s2208_s17, 4  ;;  %s932_s28 = sshll.u32 %s1981_s30, 4  ;;  %s2348_s20 = int_to_ptr.vmem [resolvable:$true] %s914_s20  ;;  %s2371_s28 = int_to_ptr.vmem [resolvable:$true] %s932_s28 }
  0x72   : > { %v413_v15 = vsub.f32 %v1936_v3, %v2045_v57  ;;  %vm811_vm10 = vcmp.lt.s32.totalorder %v808_v9, %v783_v52  ;;  %vm813_vm11 = vcmp.lt.s32.totalorder %v810_v14, %v785_v53  ;;  %v415_v23 = vsub.f32 %v1941_v5, %v2045_v57  ;;  %s2361_s27 = scalar_lea.hbm %s2612_s3, %s2097_s12  ;;  %s2377_s10 = scalar_lea.hbm %s2613_s4, %s2097_s12 }
  0x73   : > { %v417_v63 = vsub.f32 %v1944_v6, %v2045_v57  ;;  %v812_v24 = vsel %vm811_vm10, %v808_v9, %v783_v52  ;;  %v814_v25 = vsel %vm813_vm11, %v810_v14, %v785_v53  ;;  %v443_v21 = vmul.f32 1.442695, %v409_v18  ;;  %s2396_s12 = scalar_lea.sflag [#allocation9], %s870_s11  ;;  %s1604_s25 = scalar_lea.vmem %s2348_s20, 256 }
  0x74   : > { %vm815_vm12 = vcmp.lt.s32.totalorder %v812_v24, %v787_v4  ;;  %vm817_vm13 = vcmp.lt.s32.totalorder %v814_v25, %v789_v8  ;;  %v2192_v26 = vmax.f32 %v404_v59, %v405_v61  ;;  %v419_v3 = vsub.f32 %v1951_v10, %v2045_v57  ;;  %p1605_p5 = scmp.ne.s32.totalorder %s2348_s20, %s1604_s25  ;;  %s1758_s26 = smov [#allocation8]  }
  0x75   : > { %v447_v5 = vmul.f32 1.442695, %v411_v22  ;;  %v816_v27 = vsel %vm815_vm12, %v812_v24, %v787_v4  ;;  %v818_v6 = vsel %vm817_vm13, %v814_v25, %v789_v8  ;;  %v421_v31 = vsub.f32 %v1954_v11, %v2045_v57  ;;  %s1608_s7 = sshll.u32 %s1758_s26, 4  ;;  %s1609_s7 = int_to_ptr.vmem [resolvable:$false] %s1608_s7 }
  0x76   : > { %v451_v33 = vmul.f32 1.442695, %v413_v15  ;;  %vm819_vm14 = vcmp.lt.s32.totalorder %v816_v27, %v818_v6  ;;  %v423_v1 = vsub.f32 %v1957_v12, %v2045_v57  ;;  %v425_v18 = vsub.f32 %v1960_v13, %v2045_v57  ;;  %p1606_p6 = pnand %p1605_p5, %p1848_p9  ;;  %s1610_s13 = scalar_lea.vmem %s1609_s7, 512 }
  0x77   : > { %v455_v34 = vmul.f32 1.442695, %v415_v23  ;;  %v820_v35 = vsel %vm819_vm14, %v816_v27, %v818_v6  ;;  %v427_v10 = vsub.f32 %v1985_v28, %v2045_v57  ;;  %1454 = vpow2.f32 %v443_v21  ;;  %p1611_p7 = scmp.lt.s32.totalorder %s2348_s20, %s1609_s7  ;;  %p1612_p1 = scmp.lt.s32.totalorder %s1610_s13, %s1604_s25 }
  0x78   : > { %v459_v2 = vmul.f32 1.442695, %v417_v63  ;;  %851 = vst [vmem:[%s2208_s17] sm:$0xff] %v820_v35  ;;  %v410_v11 = vsub.f32 %v1971_v19, %v2192_v26  ;;  %1456 = vpow2.f32 %v447_v5  ;;  %v463_v22 = vmul.f32 1.442695, %v419_v3  ;;  %p1607_p4 = pneg %p1606_p6 }
  0x79   : > { %v412_v12 = vsub.f32 %v1968_v17, %v2192_v26  ;;  %v407_v13 = vsub.f32 %v1927_v0, %v2045_v57  ;;  %v429_v36 = vsub.f32 %v1988_v29, %v2045_v57  ;;  %v431_v37 = vsub.f32 %v2003_v38, %v2045_v57  ;;  %p1613_p10 = por %p1612_p1, %p1611_p7 }
  0x7a   : > { %1458 = vpow2.f32 %v451_v33  ;;  %v414_v44 = vsub.f32 %v1974_v20, %v2192_v26  ;;  %v433_v45 = vsub.f32 %v2006_v39, %v2045_v57  ;;  %v2225_v49 = vmul.f32 1.442695, %v421_v31 }
  0x7b   : > { %1460 = vpow2.f32 %v455_v34  ;;  %v2227_v51 = vmul.f32 1.442695, %v423_v1  ;;  %v416_v0 = vsub.f32 %v1991_v30, %v2192_v26  ;;  %v418_v52 = vsub.f32 %v1997_v32, %v2192_v26  ;;  %p1614_p13 = pnand %p1613_p10, %p1607_p4 }
  0x7c   : > { %1462 = vpow2.f32 %v459_v2  ;;  %v445_v53 = vmul.f32 1.442695, %v410_v11  ;;  %v2233_v55 = vmul.f32 1.442695, %v425_v18  ;;  %v449_v58 = vmul.f32 1.442695, %v412_v12 }
  0x7d   : > { %1464 = vpow2.f32 %v463_v22  ;;  %v439_v59 = vmul.f32 1.442695, %v407_v13  ;;  %v420_v61 = vsub.f32 %v2009_v40, %v2192_v26  ;;  %v422_v4 = vsub.f32 %v2013_v42, %v2192_v26 }
  0x7e   : > { %v424_v8 = vsub.f32 %v2029_v48, %v2192_v26  ;;  %v453_v9 = vmul.f32 1.442695, %v414_v44  ;;  %vm728_vm15 = vcmp.eq.f32.partialorder %v1965_v16, %v2192_v26  ;;  %vm730_vm0 = vcmp.eq.f32.partialorder %v1971_v19, %v2192_v26 }
  0x7f   : > { %vm732_vm1 = vcmp.eq.f32.partialorder %v1968_v17, %v2192_v26  ;;  %vm734_vm2 = vcmp.eq.f32.partialorder %v1974_v20, %v2192_v26  ;;  %v426_v14 = vsub.f32 %v2033_v50, %v2192_v26  ;;  %1466 = vpow2.f32 %v445_v53 }
  0x80   : > { %v457_v15 = vmul.f32 1.442695, %v416_v0  ;;  %v2251_v23 = vmul.f32 1.442695, %v418_v52  ;;  %1468 = vpow2.f32 %v449_v58  ;;  %vm736_vm3 = vcmp.eq.f32.partialorder %v1991_v30, %v2192_v26 }
  0x81   : > { %vm738_vm4 = vcmp.eq.f32.partialorder %v1997_v32, %v2192_v26  ;;  %vm740_vm5 = vcmp.eq.f32.partialorder %v2009_v40, %v2192_v26  ;;  %v760_v17 = vsel %vm728_vm15, 0, %v1754_v7  ;;  %v762_v19 = vsel %vm730_vm0, 1, %v1754_v7 }
  0x82   : > { %v764_v20 = vsel %vm732_vm1, 2, %v1754_v7  ;;  %v766_v63 = vsel %vm734_vm2, 3, %v1754_v7  ;;  %1470 = vpow2.f32 %v453_v9  ;;  %vm742_vm6 = vcmp.eq.f32.partialorder %v2013_v42, %v2192_v26 }
  0x83   : > { %vm744_vm7 = vcmp.eq.f32.partialorder %v2029_v48, %v2192_v26  ;;  %vm746_vm8 = vcmp.eq.f32.partialorder %v2033_v50, %v2192_v26  ;;  %vm748_vm9 = vcmp.eq.f32.partialorder %v2039_v54, %v2192_v26  ;;  %vm750_vm10 = vcmp.eq.f32.partialorder %v2043_v56, %v2192_v26 }
  0x84   : > { %v768_v30 = vsel %vm736_vm3, 4, %v1754_v7  ;;  %v770_v32 = vsel %vm738_vm4, 5, %v1754_v7  ;;  %v2275_v24 = vpop.eup %1454  ;;  %v772_v25 = vsel %vm740_vm5, 6, %v1754_v7  ;;  %vm821_vm11 = vcmp.lt.s32.totalorder %v760_v17, %v764_v20 }
  0x85   : > { %vm823_vm12 = vcmp.lt.s32.totalorder %v762_v19, %v766_v63  ;;  %v408_v21 = vsub.f32 %v1965_v16, %v2192_v26  ;;  %v2280_v3 = vpop.eup %1456  ;;  %v774_v5 = vsel %vm742_vm6, 7, %v1754_v7  ;;  %v822_v27 = vsel %vm821_vm11, %v760_v17, %v764_v20 }
  0x86   : > { %v824_v6 = vsel %vm823_vm12, %v762_v19, %v766_v63  ;;  %1472 = vpow2.f32 %v439_v59  ;;  %vm752_vm13 = vcmp.eq.f32.partialorder %v2049_v60, %v2192_v26  ;;  %vm825_vm14 = vcmp.lt.s32.totalorder %v822_v27, %v768_v30 }
  0x87   : > { %v2283_v31 = vpop.eup %1458  ;;  %vm827_vm15 = vcmp.lt.s32.totalorder %v824_v6, %v770_v32  ;;  %v441_v33 = vmul.f32 1.442695, %v408_v21  ;;  %v776_v16 = vsel %vm744_vm7, 8, %v1754_v7  ;;  %v778_v18 = vsel %vm746_vm8, 9, %v1754_v7 }
  0x88   : > { %v2287_v1 = vpop.eup %1460  ;;  %v826_v34 = vsel %vm825_vm14, %v822_v27, %v768_v30  ;;  %v828_v35 = vsel %vm827_vm15, %v824_v6, %v770_v32  ;;  %vm754_vm0 = vcmp.eq.f32.partialorder %v2061_v62, %v2192_v26  ;;  %v780_v22 = vsel %vm748_vm9, 10, %v1754_v7 }
  0x89   : > { %v2297_v2 = vpop.eup %1462  ;;  %vm829_vm1 = vcmp.lt.s32.totalorder %v826_v34, %v772_v25  ;;  %vm831_vm2 = vcmp.lt.s32.totalorder %v828_v35, %v774_v5  ;;  %1474 = vpow2.f32 %v441_v33  ;;  %v782_v12 = vsel %vm750_vm10, 11, %v1754_v7 }
  0x8a   : > { %v2301_v11 = vpop.eup %1464  ;;  %v830_v13 = vsel %vm829_vm1, %v826_v34, %v772_v25  ;;  %v832_v44 = vsel %vm831_vm2, %v828_v35, %v774_v5  ;;  %vm756_vm3 = vcmp.eq.f32.partialorder %v2125_v41, %v2192_v26  ;;  %vm758_vm4 = vcmp.eq.f32.partialorder %v2128_v43, %v2192_v26 }
  0x8b   : > { %vm833_vm5 = vcmp.lt.s32.totalorder %v830_v13, %v776_v16  ;;  %vm835_vm6 = vcmp.lt.s32.totalorder %v832_v44, %v778_v18  ;;  %v784_v0 = vsel %vm752_vm13, 12, %v1754_v7  ;;  %v786_v52 = vsel %vm754_vm0, 13, %v1754_v7 }
  0x8c   : > { %v834_v53 = vsel %vm833_vm5, %v830_v13, %v776_v16  ;;  %v836_v58 = vsel %vm835_vm6, %v832_v44, %v778_v18  ;;  %v2320_v59 = vpop.eup %1466  ;;  %1476 = vpow2.f32 %v457_v15  ;;  %v465_v9 = vmul.f32 1.442695, %v420_v61 }
  0x8d   : > { %vm837_vm7 = vcmp.lt.s32.totalorder %v834_v53, %v780_v22  ;;  %vm839_vm8 = vcmp.lt.s32.totalorder %v836_v58, %v782_v12  ;;  %v2325_v17 = vpop.eup %1468  ;;  %v788_v19 = vsel %vm756_vm3, 14, %v1754_v7  ;;  %v790_v20 = vsel %vm758_vm4, 15, %v1754_v7 }
  0x8e   : > { %v838_v63 = vsel %vm837_vm7, %v834_v53, %v780_v22  ;;  %v840_v30 = vsel %vm839_vm8, %v836_v58, %v782_v12  ;;  %1478 = vpow2.f32 %v2251_v23  ;;  %v469_v40 = vmul.f32 1.442695, %v422_v4 }
  0x8f   : > { %vm841_vm9 = vcmp.lt.s32.totalorder %v838_v63, %v784_v0  ;;  %vm843_vm10 = vcmp.lt.s32.totalorder %v840_v30, %v786_v52  ;;  %v2334_v61 = vpop.eup %1470  ;;  %1480 = vpow2.f32 %v2225_v49  ;;  %v428_v15 = vsub.f32 %v2039_v54, %v2192_v26 }
  0x90   : > { %v842_v7 = vsel %vm841_vm9, %v838_v63, %v784_v0  ;;  %v844_v32 = vsel %vm843_vm10, %v840_v30, %v786_v52  ;;  %1482 = vpow2.f32 %v465_v9  ;;  %v473_v23 = vmul.f32 1.442695, %v424_v8 }
  0x91   : > { %vm845_vm11 = vcmp.lt.s32.totalorder %v842_v7, %v788_v19  ;;  %vm847_vm12 = vcmp.lt.s32.totalorder %v844_v32, %v790_v20  ;;  %1484 = vpow2.f32 %v2227_v51  ;;  %v479_v42 = vmul.f32 1.442695, %v427_v10 }
  0x92   : > { %v846_v54 = vsel %vm845_vm11, %v842_v7, %v788_v19  ;;  %v848_v49 = vsel %vm847_vm12, %v844_v32, %v790_v20  ;;  %v430_v48 = vsub.f32 %v2043_v56, %v2192_v26  ;;  %1486 = vpow2.f32 %v469_v40 }
  0x93   : > { %v2350_v4 = vpop.eup %1472  ;;  %v477_v51 = vmul.f32 1.442695, %v426_v14  ;;  %vm849_vm13 = vcmp.lt.s32.totalorder %v846_v54, %v848_v49  ;;  %1488 = vpow2.f32 %v2233_v55  ;;  %v2367_v28 = vmul.f32 1.442695, %v429_v36 }
  0x94   : > { %v850_v56 = vsel %vm849_vm13, %v846_v54, %v848_v49  ;;  %v503_v50 = vadd.f32 %v2350_v4, %v2275_v24  ;;  %v432_v10 = vsub.f32 %v2049_v60, %v2192_v26  ;;  %1490 = vpow2.f32 %v473_v23 }
  0x95   : > { %v2381_v29 = vmul.f32 1.442695, %v428_v15  ;;  %852 = vst [vmem:[%s2208_s17 + $0x8] sm:$0xff] %v850_v56  ;;  %v435_v55 = vsub.f32 %v2023_v46, %v2045_v57  ;;  %1492 = vpow2.f32 %v479_v42  ;;  %v2391_v8 = vmul.f32 1.442695, %v431_v37 }
  0x96   : > { %v2384_v36 = vpop.eup %1474  ;;  %v504_v14 = vadd.f32 %v2280_v3, %v503_v50 }
  0x97   : > { %1617 = shalt.err (!%p1614_p13)
}
  0x98   : > { %s1618_s24 = scalar_lea.hbm %s2361_s27, 256  ;;  %s1622_s30 = scalar_lea.hbm %s2612_s3, 512 }
  0x99   : > { %p1619_p3 = scmp.ne.s32.totalorder %s2361_s27, %s1618_s24  ;;  %p1623_p2 = scmp.lt.s32.totalorder %s2361_s27, %s2612_s3 }
  0x9a   : > { %p1624_p5 = scmp.lt.s32.totalorder %s1622_s30, %s1618_s24 }
  0x9b   : > { %p1620_p8 = pnand %p1619_p3, %p1848_p9 }
  0x9c   : > { %p1625_p6 = por %p1624_p5, %p1623_p2 }
  0x9d   : > { %p1621_p0 = pneg %p1620_p8 }
  0x9f   : > { %p1626_p4 = pnand %p1625_p6, %p1621_p0 }
  0xa1   : > { %1629 = shalt.err (!%p1626_p4)
}
  0xa2   : > { %1370 = dma.vmem_to_hbm [thread:$0]  (%p1848_p9), %s2348_s20, 256, %s2361_s27, %s2396_s12, %s1756_s29, %s1756_s29, %s1757_s14   ;;  %v434_v38 = vsub.f32 %v2061_v62, %v2192_v26  ;;  %1494 = vpow2.f32 %v477_v51  ;;  %v485_v37 = vmul.f32 1.442695, %v430_v48  ;;  %v518_v25 = vadd.f32 %v2384_v36, %v2320_v59 }
  0xa3   : > { %s1630_s15 = scalar_lea.vmem %s2371_s28, 256  ;;  %s1759_s25 = smov [#allocation10]  }
  0xa4   : > { %p1631_p7 = scmp.ne.s32.totalorder %s2371_s28, %s1630_s15  ;;  %s1634_s26 = sshll.u32 %s1759_s25, 4  ;;  %s1635_s26 = int_to_ptr.vmem [resolvable:$false] %s1634_s26 }
  0xa5   : > { %s1636_s7 = scalar_lea.vmem %s1635_s26, 512  ;;  %p1637_p13 = scmp.lt.s32.totalorder %s2371_s28, %s1635_s26 }
  0xa6   : > { %p1632_p1 = pnand %p1631_p7, %p1848_p9  ;;  %p1638_p3 = scmp.lt.s32.totalorder %s1636_s7, %s1630_s15 }
  0xa8   : > { %p1633_p10 = pneg %p1632_p1  ;;  %p1639_p8 = por %p1638_p3, %p1637_p13 }
  0xaa   : > { %p1640_p0 = pnand %p1639_p8, %p1633_p10 }
  0xac   : > { %1643 = shalt.err (!%p1640_p0)
}
  0xad   : > { %s1644_s20 = scalar_lea.hbm %s2377_s10, 256  ;;  %s1648_s24 = scalar_lea.hbm %s2613_s4, 512 }
  0xae   : > { %p1645_p2 = scmp.ne.s32.totalorder %s2377_s10, %s1644_s20  ;;  %p1649_p4 = scmp.lt.s32.totalorder %s2377_s10, %s2613_s4 }
  0xaf   : > { %p1650_p7 = scmp.lt.s32.totalorder %s1648_s24, %s1644_s20 }
  0xb0   : > { %p1646_p5 = pnand %p1645_p2, %p1848_p9 }
  0xb1   : > { %p1651_p1 = por %p1650_p7, %p1649_p4 }
  0xb2   : > { %p1647_p6 = pneg %p1646_p5 }
  0xb4   : > { %p1652_p10 = pnand %p1651_p1, %p1647_p6 }
  0xb6   : > { %1655 = shalt.err (!%p1652_p10)
}
  0xb7   : > { %1371 = dma.vmem_to_hbm [thread:$0]  (%p1848_p9), %s2371_s28, 256, %s2377_s10, %s2396_s12, %s1756_s29, %s1756_s29, %s1757_s14   ;;  %v437_v62 = vsub.f32 %v2026_v47, %v2045_v57  ;;  %1496 = vpow2.f32 %v2367_v28  ;;  %v491_v21 = vmul.f32 1.442695, %v433_v45  ;;  %v505_v5 = vadd.f32 %v2283_v31, %v504_v14  ;;  %v2464_v47 = vpop.eup %1476 }
  0xb8   : > { %v436_v27 = vsub.f32 %v2125_v41, %v2192_v26  ;;  %1498 = vpow2.f32 %v2381_v29  ;;  %v489_v6 = vmul.f32 1.442695, %v432_v10  ;;  %v519_v33 = vadd.f32 %v2325_v17, %v518_v25  ;;  %v2474_v18 = vpop.eup %1478  ;;  %s1178_s29 = sshll.u32 %s1907_s0, 7  ;;  %s1262_s28 = sshll.u32 %s1740_s21, 11 }
  0xb9   : > { %1500 = vpow2.f32 %v2391_v8  ;;  %v495_v39 = vmul.f32 1.442695, %v435_v55  ;;  %v506_v45 = vadd.f32 %v2287_v1, %v505_v5  ;;  %v438_v41 = vsub.f32 %v2128_v43, %v2192_v26  ;;  %v1481_v22 = vpop.eup %1480  ;;  %s2525_s14 = scalar_lea.vmem [#allocation7], %s1178_s29  ;;  %s2555_s30 = scalar_lea.hbm %s2611_s2, %s1262_s28 }
  0xba   : > { %1502 = vpow2.f32 %v485_v37  ;;  %v493_v16 = vmul.f32 1.442695, %v434_v38  ;;  %v520_v60 = vadd.f32 %v2334_v61, %v519_v33  ;;  %v499_v34 = vmul.f32 1.442695, %v437_v62  ;;  %v2478_v57 = vpop.eup %1482  ;;  %s896_s10 = sshll.u32 %s2525_s14, 4  ;;  %s866_s16 = scalar_lea.sflag [#allocation4], %s1907_s0  ;;  %s2557_s10 = int_to_ptr.vmem [resolvable:$true] %s896_s10 }
  0xbb   : > { %1504 = vpow2.f32 %v491_v21  ;;  %v507_v35 = vadd.f32 %v2297_v2, %v506_v45  ;;  %v497_v12 = vmul.f32 1.442695, %v436_v27  ;;  %v1485_v26 = vpop.eup %1484  ;;  %v501_v13 = vmul.f32 1.442695, %v438_v41  ;;  %s1656_s9 = scalar_lea.vmem %s2557_s10, 2048  ;;  %s1760_s15 = smov [#allocation7]  }
  0xbc   : > { %1506 = vpow2.f32 %v489_v6  ;;  %v521_v46 = vadd.f32 %v2464_v47, %v520_v60  ;;  %v1487_v0 = vpop.eup %1486  ;;  %p1657_p13 = scmp.ne.s32.totalorder %s2557_s10, %s1656_s9  ;;  %s1660_s25 = sshll.u32 %s1760_s15, 4  ;;  %s1661_s25 = int_to_ptr.vmem [resolvable:$false] %s1660_s25 }
  0xbd   : > { %1508 = vpow2.f32 %v495_v39  ;;  %v508_v43 = vadd.f32 %v2301_v11, %v507_v35  ;;  %v1489_v53 = vpop.eup %1488  ;;  %s1662_s26 = scalar_lea.vmem %s1661_s25, 4096  ;;  %p1663_p0 = scmp.lt.s32.totalorder %s2557_s10, %s1661_s25 }
  0xbe   : > { %1510 = vpow2.f32 %v493_v16  ;;  %v522_v44 = vadd.f32 %v2474_v18, %v521_v46  ;;  %v2483_v9 = vpop.eup %1490  ;;  %p1658_p3 = pnand %p1657_p13, %p1848_p9  ;;  %p1664_p2 = scmp.lt.s32.totalorder %s1662_s26, %s1656_s9 }
  0xbf   : > { %1512 = vpow2.f32 %v499_v34  ;;  %v509_v52 = vadd.f32 %v1481_v22, %v508_v43  ;;  %v1493_v20 = vpop.eup %1492 }
  0xc0   : > { %1514 = vpow2.f32 %v497_v12  ;;  %v523_v58 = vadd.f32 %v2478_v57, %v522_v44  ;;  %v2485_v30 = vpop.eup %1494  ;;  %p1659_p8 = pneg %p1658_p3  ;;  %p1665_p5 = por %p1664_p2, %p1663_p0 }
  0xc1   : > { %v510_v19 = vadd.f32 %v1485_v26, %v509_v52  ;;  %1516 = vpow2.f32 %v501_v13 }
  0xc2   : > { %v524_v63 = vadd.f32 %v1487_v0, %v523_v58  ;;  %p1666_p6 = pnand %p1665_p5, %p1659_p8 }
  0xc3   : > { %v511_v40 = vadd.f32 %v1489_v53, %v510_v19 }
  0xc4   : > { %v1497_v15 = vpop.eup %1496  ;;  %v525_v7 = vadd.f32 %v2483_v9, %v524_v63 }
  0xc5   : > { %v2488_v32 = vpop.eup %1498  ;;  %v512_v23 = vadd.f32 %v1493_v20, %v511_v40 }
  0xc6   : > { %v2490_v42 = vpop.eup %1500  ;;  %v526_v54 = vadd.f32 %v2485_v30, %v525_v7 }
  0xc7   : > { %v1503_v49 = vpop.eup %1502  ;;  %v513_v48 = vadd.f32 %v1497_v15, %v512_v23 }
  0xc8   : > { %v2493_v51 = vpop.eup %1504  ;;  %v527_v28 = vadd.f32 %v2488_v32, %v526_v54 }
  0xc9   : > { %v1507_v56 = vpop.eup %1506  ;;  %v514_v50 = vadd.f32 %v2490_v42, %v513_v48 }
  0xca   : > { %v2497_v10 = vpop.eup %1508  ;;  %v528_v29 = vadd.f32 %v1503_v49, %v527_v28 }
  0xcb   : > { %v1511_v55 = vpop.eup %1510  ;;  %v515_v8 = vadd.f32 %v2493_v51, %v514_v50 }
  0xcc   : > { %v2500_v14 = vpop.eup %1512  ;;  %v529_v38 = vadd.f32 %v1507_v56, %v528_v29 }
  0xcd   : > { %v2502_v37 = vpop.eup %1514  ;;  %v516_v25 = vadd.f32 %v2497_v10, %v515_v8 }
  0xce   : > { %v530_v62 = vadd.f32 %v1511_v55, %v529_v38  ;;  %v2505_v21 = vpop.eup %1516 }
  0xcf   : > { %v517_v5 = vadd.f32 %v2500_v14, %v516_v25 }
  0xd0   : > { %v531_v27 = vadd.f32 %v2502_v37, %v530_v62 }
  0xd1   : > { %1518 = vrcp.f32 %v517_v5 }
  0xd2   : > { %v532_v6 = vadd.f32 %v2505_v21, %v531_v27 }
  0xd4   : > { %1520 = vrcp.f32 %v532_v6 }
  0xde   : > { %v1519_v33 = vpop.eup %1518 }
  0xdf   : > { %v534_v39 = vmul.f32 %v1519_v33, %v2350_v4  ;;  %v537_v45 = vmul.f32 %v1519_v33, %v2275_v24  ;;  %v539_v41 = vmul.f32 %v1519_v33, %v2280_v3  ;;  %v541_v16 = vmul.f32 %v1519_v33, %v2283_v31 }
  0xe0   : > { %v543_v60 = vmul.f32 %v1519_v33, %v2287_v1  ;;  %v545_v34 = vmul.f32 %v1519_v33, %v2297_v2  ;;  %v547_v35 = vmul.f32 %v1519_v33, %v2301_v11  ;;  %v549_v12 = vmul.f32 %v1519_v33, %v1481_v22 }
  0xe1   : > { %v1521_v46 = vpop.eup %1520  ;;  %v551_v43 = vmul.f32 %v1519_v33, %v1485_v26  ;;  %v553_v13 = vmul.f32 %v1519_v33, %v1489_v53  ;;  %v555_v44 = vmul.f32 %v1519_v33, %v1493_v20  ;;  %v557_v52 = vmul.f32 %v1519_v33, %v1497_v15 }
  0xe2   : > { %v536_v4 = vmul.f32 %v1521_v46, %v2384_v36  ;;  %v538_v24 = vmul.f32 %v1521_v46, %v2320_v59  ;;  %v540_v3 = vmul.f32 %v1521_v46, %v2325_v17  ;;  %v542_v31 = vmul.f32 %v1521_v46, %v2334_v61 }
  0xe3   : > { %v544_v1 = vmul.f32 %v1521_v46, %v2464_v47  ;;  %v546_v2 = vmul.f32 %v1521_v46, %v2474_v18  ;;  %v548_v11 = vmul.f32 %v1521_v46, %v2478_v57  ;;  %v550_v22 = vmul.f32 %v1521_v46, %v1487_v0 }
  0xe4   : > { %v1269_v58 = vpack.c.bf16 %v536_v4, %v534_v39  ;;  %v1274_v26 = vpack.c.bf16 %v538_v24, %v537_v45  ;;  %v1279_v53 = vpack.c.bf16 %v540_v3, %v539_v41  ;;  %v1284_v19 = vpack.c.bf16 %v542_v31, %v541_v16 }
  0xe5   : > { %v1289_v20 = vpack.c.bf16 %v544_v1, %v543_v60  ;;  %v1294_v63 = vpack.c.bf16 %v546_v2, %v545_v34  ;;  %v1299_v36 = vpack.c.bf16 %v548_v11, %v547_v35  ;;  %v1304_v40 = vpack.c.bf16 %v550_v22, %v549_v12 }
  0xe6   : > { %1270 = vst [vmem:[%s2525_s14] sm:$0xff] %v1269_v58   ;;  %1346 = vst [vmem:[%s2525_s14 + $0x8] sm:$0xff] %v1274_v26   ;;  %v552_v59 = vmul.f32 %v1521_v46, %v2483_v9  ;;  %v554_v17 = vmul.f32 %v1521_v46, %v2485_v30  ;;  %v556_v61 = vmul.f32 %v1521_v46, %v2488_v32 }
  0xe7   : > { %1347 = vst [vmem:[%s2525_s14 + $0x10] sm:$0xff] %v1279_v53   ;;  %1348 = vst [vmem:[%s2525_s14 + $0x18] sm:$0xff] %v1284_v19   ;;  %v558_v47 = vmul.f32 %v1521_v46, %v1503_v49  ;;  %v559_v18 = vmul.f32 %v1519_v33, %v2490_v42  ;;  %v560_v57 = vmul.f32 %v1521_v46, %v1507_v56 }
  0xe8   : > { %1349 = vst [vmem:[%s2525_s14 + $0x20] sm:$0xff] %v1289_v20   ;;  %1350 = vst [vmem:[%s2525_s14 + $0x28] sm:$0xff] %v1294_v63   ;;  %v561_v0 = vmul.f32 %v1519_v33, %v2493_v51  ;;  %v562_v9 = vmul.f32 %v1521_v46, %v1511_v55  ;;  %v1309_v15 = vpack.c.bf16 %v552_v59, %v551_v43 }
  0xe9   : > { %1351 = vst [vmem:[%s2525_s14 + $0x30] sm:$0xff] %v1299_v36   ;;  %1352 = vst [vmem:[%s2525_s14 + $0x38] sm:$0xff] %v1304_v40   ;;  %v1314_v30 = vpack.c.bf16 %v554_v17, %v553_v13  ;;  %v1319_v7 = vpack.c.bf16 %v556_v61, %v555_v44  ;;  %v1324_v32 = vpack.c.bf16 %v558_v47, %v557_v52 }
  0xea   : > { %v1329_v23 = vpack.c.bf16 %v560_v57, %v559_v18  ;;  %v1334_v54 = vpack.c.bf16 %v562_v9, %v561_v0  ;;  %v563_v42 = vmul.f32 %v1519_v33, %v2497_v10  ;;  %v564_v49 = vmul.f32 %v1521_v46, %v2502_v37  ;;  %1353 = vst [vmem:[%s2525_s14 + $0x40] sm:$0xff] %v1309_v15  }
  0xeb   : > { %1354 = vst [vmem:[%s2525_s14 + $0x48] sm:$0xff] %v1314_v30   ;;  %1355 = vst [vmem:[%s2525_s14 + $0x50] sm:$0xff] %v1319_v7   ;;  %v565_v48 = vmul.f32 %v1519_v33, %v2500_v14  ;;  %v566_v51 = vmul.f32 %v1521_v46, %v2505_v21 }
  0xec   : > { %1356 = vst [vmem:[%s2525_s14 + $0x58] sm:$0xff] %v1324_v32   ;;  %1357 = vst [vmem:[%s2525_s14 + $0x60] sm:$0xff] %v1329_v23   ;;  %v1339_v28 = vpack.c.bf16 %v564_v49, %v563_v42 }
  0xed   : > { %1358 = vst [vmem:[%s2525_s14 + $0x68] sm:$0xff] %v1334_v54   ;;  %v1344_v56 = vpack.c.bf16 %v566_v51, %v565_v48 }
  0xee   : > { %1359 = vst [vmem:[%s2525_s14 + $0x70] sm:$0xff] %v1339_v28  }
  0xef   : > { %1360 = vst [vmem:[%s2525_s14 + $0x78] sm:$0xff] %v1344_v56  }
  0xf0   : > { %1669 = shalt.err (!%p1666_p6)
}
  0xf1   : > { %s1670_s7 = scalar_lea.hbm %s2555_s30, 2048  ;;  %s1674_s13 = scalar_lea.hbm %s2611_s2, 4096 }
  0xf2   : > { %p1671_p4 = scmp.ne.s32.totalorder %s2555_s30, %s1670_s7  ;;  %p1675_p10 = scmp.lt.s32.totalorder %s2555_s30, %s2611_s2 }
  0xf3   : > { %p1676_p13 = scmp.lt.s32.totalorder %s1674_s13, %s1670_s7 }
  0xf4   : > { %p1672_p7 = pnand %p1671_p4, %p1848_p9 }
  0xf5   : > { %p1677_p3 = por %p1676_p13, %p1675_p10 }
  0xf6   : > { %p1673_p1 = pneg %p1672_p7 }
  0xf8   : > { %p1678_p8 = pnand %p1677_p3, %p1673_p1 }
  0xfa   : > { %1681 = shalt.err (!%p1678_p8)
}
  0xfb   : > { %s1761_s11 = smov 64   ;;  %s1762_s29 = smov 4  }
  0xfc   : > { %1369 = dma.vmem_to_hbm [thread:$0]  (%p1848_p9), %s2557_s10, 2048, %s2555_s30, %s866_s16, %s1761_s11, %s1761_s11, %s1762_s29  }
  0xfd PF: > { %s965_s14 = sand.u32 1, %s1728_s18   ;;  %p1385_p0 = pnand %p1168_p12, %p1857_p11 }
  0xfe   : > { %s966_s28 = scalar_lea.sflag [#allocation4], %s965_s14 }
  0xff   : > { %p1386_p2 = pneg %p1385_p0 }
 0x101   : > { %1715 = dma.done.wait (%p1386_p2), %s966_s28, 2048  }
 0x102   : > { %1717 = vsyncadd (%p1386_p2), %s966_s28, 4294965248  ;;  %s2629_s21 = sadd.s32 4294967294, %s1748_s23  }
 0x103   : > { %s974_s12 = sand.u32 1, %s2629_s21  }
 0x104   : > { %s975_s9 = scalar_lea.sflag [#allocation9], %s974_s12 }
 0x105   : > { %1719 = dma.done.wait (%p1386_p2), %s975_s9, 512  }
 0x106   : > { %1721 = vsyncadd (%p1386_p2), %s975_s9, 4294966784  ;;  %s993_s6 = scalar_lea.sflag [#allocation12], %s965_s14 }
 0x107   : > { %1723 = dma.done.wait (%p1386_p2), %s993_s6, 256  }
 0x108   : > { %1725 = vsyncadd (%p1386_p2), %s993_s6, 4294967040  ;;  %s31_s23 = sadd.s32 1, %s1748_s23   ;;  %s2630_s8 = sld [smem:[#allocation18_spill]] }
 0x109   : > { %p28_p9 = scmp.ge.s32.totalorder %s31_s23, 4   ;;  %s2631_s20 = sld [smem:[#allocation20_spill]] }
 0x10a   : > { %s2632_s0 = sld [smem:[#allocation19_spill]]  ;;  %s2633_s18 = smov %s1732_s19 }
 0x10b   : > { %s2635_s21 = smov %s1744_s22 }
 0x10c   :  { %30 = sbr.rel (!%p28_p9) target bundleno = 14 (0xe), region = 135 }
 0x10e   : > { %s2634_s19 = smov %s2630_s8 }
 0x110   : > { %s2636_s22 = smov %s2632_s0 }
 0x111   :  { %998 = vsyncpa [#allocation3], 1 }
 0x112   :  { %1000 = vsyncpa [#allocation3 + $0x1], 1 }
 0x113   :  { %1001 = vsyncpa [#allocation6], 1 }
 0x114   :  { %1003 = vsyncpa [#allocation6 + $0x1], 1 }
 0x115   :  { %1004 = vsyncpa [#allocation4], 1 }
 0x116   :  { %1006 = vsyncpa [#allocation4 + $0x1], 1 }
 0x117   :  { %1007 = vsyncpa [#allocation9], 1 }
 0x118   :  { %1009 = vsyncpa [#allocation9 + $0x1], 1 }
 0x119   :  { %1010 = vsyncpa [#allocation12], 1 }
 0x11a   :  { %1012 = vsyncpa [#allocation12 + $0x1], 1 }

</bundles_post_ra>
